<compile_context>
chip_gen: v7x
topology: tpu7x:2x2x1
jax: 0.10.0
libtpu: 0.0.40
codegen_flags: <defaults>
</compile_context>

<pallas_src>
import jax
import jax.numpy as jnp
import numpy as np
from jax import lax
from jax.experimental import pallas as pl
from jax.experimental.pallas import tpu as pltpu


LANE_CHUNK = 128  # lanes processed per inner-loop step (one full vreg width)


def _round_up(x, m):
    return (x + m - 1) // m * m


def convkb_kernel(conv_ref, fcb_ref, h_ref, r_ref, t_ref, fcw_ref, out_ref):
    """One batch tile (batch on lanes, features on sublanes).

    conv_ref : SMEM f32 [4*C]          = concat(w_head, w_rel, w_tail, conv_bias)
    fcb_ref  : SMEM f32 [1]            fc bias
    h/r/t    : VMEM f32 [D, TB]        transposed embedding tiles
    fcw_ref  : VMEM f32 [C, D, 128]    fc weight row c, lane-pre-broadcast
    out_ref  : VMEM f32 [1, TB]        lane-dense score row
    """
    C = fcw_ref.shape[0]
    D, TB = h_ref.shape
    n_chunks = TB // LANE_CHUNK

    # Per-channel conv scalars: read once from SMEM into sregs (static indices).
    wh = [conv_ref[c] for c in range(C)]
    wr = [conv_ref[C + c] for c in range(C)]
    wt = [conv_ref[2 * C + c] for c in range(C)]
    cb = [conv_ref[3 * C + c] for c in range(C)]
    fcb = fcb_ref[0]

    def chunk_body(j, carry):
        start = pl.multiple_of(j * LANE_CHUNK, LANE_CHUNK)
        sl = pl.ds(start, LANE_CHUNK)
        # Hoisted once per chunk; reused across the whole channel loop.
        h = h_ref[:, sl]                       # [D, 128]
        r = r_ref[:, sl]
        t = t_ref[:, sl]
        acc = jnp.zeros((D, LANE_CHUNK), jnp.float32)
        for c in range(C):                     # static unroll (C is small)
            # Conv2d(1, C, (1,3)) channel c fused with bias + ReLU (VPU).
            pre = h * wh[c] + r * wr[c] + t * wt[c] + cb[c]
            act = jnp.maximum(pre, 0.0)
            acc = acc + act * fcw_ref[c]       # fcw already broadcast to [D,128]
        # Weighted features summed over channels; now reduce over D (sublanes).
        score = jnp.sum(acc, axis=0, keepdims=True) + fcb   # [1, 128], lane-dense
        out_ref[:, sl] = score.astype(out_ref.dtype)
        return carry

    lax.fori_loop(0, n_chunks, chunk_body, 0)


def onlyconvkb_forward(batch_inputs, params, *, batch_tile=512):
    """batch_inputs: int32 [B, 3] = (head id, relation id, tail id)."""
    # Embedding gathers are data-dependent glue; done in plain JAX.
    # TODO(synk): for v5e-style memory-bound cases, gather rows inside the
    # kernel via pl.ANY tables + scalar-prefetched indices (and/or stream bf16).
    h = params["entity_emb"][batch_inputs[:, 0]].astype(jnp.float32)     # [B, D]
    r = params["relation_emb"][batch_inputs[:, 1]].astype(jnp.float32)   # [B, D]
    t = params["entity_emb"][batch_inputs[:, 2]].astype(jnp.float32)     # [B, D]
    B, D = h.shape

    conv_w = params["conv_w"].reshape(-1, 3).astype(jnp.float32)         # [C, 3]
    C = conv_w.shape[0]
    conv_flat = jnp.concatenate(
        [conv_w[:, 0], conv_w[:, 1], conv_w[:, 2],
         params["conv_b"].astype(jnp.float32)])                          # [4*C]
    fc_b = params["fc_b"].reshape(1).astype(jnp.float32)                 # [1]
    fcw_cd = params["fc_w"].reshape(C, D).astype(jnp.float32)            # [C, D]

    # Pad D to a sublane multiple; zero-padded feature rows contribute
    # relu(conv_bias) * 0 because fcw is zero-padded too.
    d_pad = _round_up(D, 8)
    if d_pad != D:
        fcw_cd = jnp.pad(fcw_cd, ((0, 0), (0, d_pad - D)))

    # Batch tile = lanes. Multiple of 128; prefer >=2 grid steps when the
    # batch allows it so both v7x TensorCores get tiles (grid is "parallel").
    b_ceil = _round_up(B, LANE_CHUNK)
    tb = min(_round_up(batch_tile, LANE_CHUNK), b_ceil)
    if b_ceil // tb < 2 and b_ceil >= 2 * LANE_CHUNK:
        tb = _round_up(b_ceil // 2, LANE_CHUNK)
    b_pad = _round_up(B, tb)

    pad_bd = ((0, b_pad - B), (0, d_pad - D))
    hT = jnp.pad(h, pad_bd).T                                            # [d_pad, b_pad]
    rT = jnp.pad(r, pad_bd).T
    tT = jnp.pad(t, pad_bd).T

    # Pre-broadcast fc weight rows across the lane chunk so the kernel avoids
    # per-iteration lane broadcasts of a [D,1] column (tiny, block-invariant).
    fcw_bcast = jnp.broadcast_to(fcw_cd[:, :, None], (C, d_pad, LANE_CHUNK))

    smem_spec = pl.BlockSpec(memory_space=pltpu.MemorySpace.SMEM)
    emb_spec = pl.BlockSpec((d_pad, tb), lambda i: (0, i))

    out = pl.pallas_call(
        convkb_kernel,
        out_shape=jax.ShapeDtypeStruct((1, b_pad), jnp.float32),
        grid=(b_pad // tb,),
        in_specs=[
            smem_spec,                                        # conv scalars (SMEM)
            smem_spec,                                        # fc bias (SMEM)
            emb_spec,                                         # h tile [d_pad, tb]
            emb_spec,                                         # r tile
            emb_spec,                                         # t tile
            pl.BlockSpec((C, d_pad, LANE_CHUNK),
                         lambda i: (0, 0, 0)),                # fcw, block-invariant
        ],
        out_specs=pl.BlockSpec((1, tb), lambda i: (0, i)),    # lane-dense store
        compiler_params=pltpu.CompilerParams(
            dimension_semantics=("parallel",)),
    )(conv_flat, fc_b, hT, rT, tT, fcw_bcast)

    # Padded batch columns carry garbage scores (relu(conv_b)*sum(fcw)); slice off.
    return out[0, :B][:, None]


def onlyconvkb_forward_ref(batch_inputs, params):
    """Pure-JAX reference of the same forward pass."""
    h = params["entity_emb"][batch_inputs[:, 0]]
    r = params["relation_emb"][batch_inputs[:, 1]]
    t = params["entity_emb"][batch_inputs[:, 2]]
    x = jnp.stack([h, r, t], axis=-1)                        # [B, D, 3]
    w = params["conv_w"].reshape(-1, 3)                      # [C, 3]
    conv = jnp.einsum("bdk,ck->bcd", x, w) + params["conv_b"][None, :, None]
    act = jax.nn.relu(conv)                                  # [B, C, D]
    flat = act.reshape(act.shape[0], -1)                     # [B, C*D] (c-major, d-minor)
    return flat @ params["fc_w"].reshape(-1, 1) + params["fc_b"]


def init_params(key, n_entities, n_relations, dim, out_channels):
    k1, k2, k3, k4, k5, k6 = jax.random.split(key, 6)
    entity_emb = jax.random.normal(k1, (n_entities, dim), jnp.float32)
    relation_emb = jax.random.normal(k2, (n_relations, dim), jnp.float32)
    # Conv2d(in=1, out=C, kernel=(1,3)) weight/bias
    conv_w = jax.random.normal(k3, (out_channels, 1, 1, 3), jnp.float32) * 0.5
    conv_b = jax.random.normal(k4, (out_channels,), jnp.float32) * 0.1
    # Linear(dim * C, 1)
    fc_w = jax.random.normal(k5, (1, out_channels * dim), jnp.float32) * np.sqrt(
        1.0 / (out_channels * dim))
    fc_b = jax.random.normal(k6, (1,), jnp.float32) * 0.1
    return {"entity_emb": entity_emb, "relation_emb": relation_emb,
            "conv_w": conv_w, "conv_b": conv_b, "fc_w": fc_w, "fc_b": fc_b}


if __name__ == "__main__":
    # TODO(synk): training-mode dropout layers are identity at inference and are
    # not modeled; args.alpha (leaky slope) is unused by ConvKBLayer's ReLU.
    n_entities, n_relations = 64, 16
    dim, n_heads, out_channels = 16, 2, 8
    D = dim * n_heads                                        # 32
    key = jax.random.PRNGKey(0)
    kp, kh, kr, kt = jax.random.split(key, 4)
    params = init_params(kp, n_entities, n_relations, D, out_channels)

    def make_batch(kh, kr, kt, batch):
        head = jax.random.randint(kh, (batch,), 0, n_entities, dtype=jnp.int32)
        rel = jax.random.randint(kr, (batch,), 0, n_relations, dtype=jnp.int32)
        tail = jax.random.randint(kt, (batch,), 0, n_entities, dtype=jnp.int32)
        return jnp.stack([head, rel, tail], axis=1)          # [B, 3]

    # Small batch (single tile, single chunk).
    batch_inputs = make_batch(kh, kr, kt, 8)
    out = onlyconvkb_forward(batch_inputs, params)
    jax.block_until_ready(out)
    ref = onlyconvkb_forward_ref(batch_inputs, params)
    np.testing.assert_allclose(np.asarray(out), np.asarray(ref), rtol=1e-4, atol=1e-4)

    # Larger batch: exercises multiple grid tiles and the inner chunk loop.
    kh2, kr2, kt2 = jax.random.split(jax.random.PRNGKey(1), 3)
    batch_inputs2 = make_batch(kh2, kr2, kt2, 300)
    out2 = onlyconvkb_forward(batch_inputs2, params)
    jax.block_until_ready(out2)
    ref2 = onlyconvkb_forward_ref(batch_inputs2, params)
    np.testing.assert_allclose(np.asarray(out2), np.asarray(ref2), rtol=1e-4, atol=1e-4)

    print("KERNEL_OK")
</pallas_src>

<mosaic_0001>
module attributes {stable_mosaic.version = 11 : i64} {
  func.func @convkb_kernel(%arg0: i32, %arg1: memref<32xf32, #tpu.memory_space<smem>>, %arg2: memref<1xf32, #tpu.memory_space<smem>>, %arg3: memref<32x128xf32, #tpu.memory_space<vmem>>, %arg4: memref<32x128xf32, #tpu.memory_space<vmem>>, %arg5: memref<32x128xf32, #tpu.memory_space<vmem>>, %arg6: memref<8x32x128xf32, #tpu.memory_space<vmem>>, %arg7: memref<1x128xf32, #tpu.memory_space<vmem>>) attributes {dimension_semantics = [#tpu.dimension_semantics<parallel>], iteration_bounds = array<i64: 1>, scalar_prefetch = 0 : i64, scratch_operands = 0 : i64, tpu.core_type = #tpu.core_type<tc>, window_params = [{transform_indices = @transform_0, window_bounds = array<i64: 32>}, {transform_indices = @transform_1, window_bounds = array<i64: 1>}, {transform_indices = @transform_2, window_bounds = array<i64: 32, 128>}, {transform_indices = @transform_3, window_bounds = array<i64: 32, 128>}, {transform_indices = @transform_4, window_bounds = array<i64: 32, 128>}, {pipeline_mode = #tpu.pipeline_mode<synchronous>, transform_indices = @transform_5, window_bounds = array<i64: 8, 32, 128>}, {transform_indices = @transform_6, window_bounds = array<i64: 1, 128>}]} {
    %c0 = arith.constant 0 : index
    %0 = memref.load %arg1[%c0] : memref<32xf32, #tpu.memory_space<smem>>
    %c1 = arith.constant 1 : index
    %1 = memref.load %arg1[%c1] : memref<32xf32, #tpu.memory_space<smem>>
    %c2 = arith.constant 2 : index
    %2 = memref.load %arg1[%c2] : memref<32xf32, #tpu.memory_space<smem>>
    %c3 = arith.constant 3 : index
    %3 = memref.load %arg1[%c3] : memref<32xf32, #tpu.memory_space<smem>>
    %c4 = arith.constant 4 : index
    %4 = memref.load %arg1[%c4] : memref<32xf32, #tpu.memory_space<smem>>
    %c5 = arith.constant 5 : index
    %5 = memref.load %arg1[%c5] : memref<32xf32, #tpu.memory_space<smem>>
    %c6 = arith.constant 6 : index
    %6 = memref.load %arg1[%c6] : memref<32xf32, #tpu.memory_space<smem>>
    %c7 = arith.constant 7 : index
    %7 = memref.load %arg1[%c7] : memref<32xf32, #tpu.memory_space<smem>>
    %c8 = arith.constant 8 : index
    %8 = memref.load %arg1[%c8] : memref<32xf32, #tpu.memory_space<smem>>
    %c9 = arith.constant 9 : index
    %9 = memref.load %arg1[%c9] : memref<32xf32, #tpu.memory_space<smem>>
    %c10 = arith.constant 10 : index
    %10 = memref.load %arg1[%c10] : memref<32xf32, #tpu.memory_space<smem>>
    %c11 = arith.constant 11 : index
    %11 = memref.load %arg1[%c11] : memref<32xf32, #tpu.memory_space<smem>>
    %c12 = arith.constant 12 : index
    %12 = memref.load %arg1[%c12] : memref<32xf32, #tpu.memory_space<smem>>
    %c13 = arith.constant 13 : index
    %13 = memref.load %arg1[%c13] : memref<32xf32, #tpu.memory_space<smem>>
    %c14 = arith.constant 14 : index
    %14 = memref.load %arg1[%c14] : memref<32xf32, #tpu.memory_space<smem>>
    %c15 = arith.constant 15 : index
    %15 = memref.load %arg1[%c15] : memref<32xf32, #tpu.memory_space<smem>>
    %c16 = arith.constant 16 : index
    %16 = memref.load %arg1[%c16] : memref<32xf32, #tpu.memory_space<smem>>
    %c17 = arith.constant 17 : index
    %17 = memref.load %arg1[%c17] : memref<32xf32, #tpu.memory_space<smem>>
    %c18 = arith.constant 18 : index
    %18 = memref.load %arg1[%c18] : memref<32xf32, #tpu.memory_space<smem>>
    %c19 = arith.constant 19 : index
    %19 = memref.load %arg1[%c19] : memref<32xf32, #tpu.memory_space<smem>>
    %c20 = arith.constant 20 : index
    %20 = memref.load %arg1[%c20] : memref<32xf32, #tpu.memory_space<smem>>
    %c21 = arith.constant 21 : index
    %21 = memref.load %arg1[%c21] : memref<32xf32, #tpu.memory_space<smem>>
    %c22 = arith.constant 22 : index
    %22 = memref.load %arg1[%c22] : memref<32xf32, #tpu.memory_space<smem>>
    %c23 = arith.constant 23 : index
    %23 = memref.load %arg1[%c23] : memref<32xf32, #tpu.memory_space<smem>>
    %c24 = arith.constant 24 : index
    %24 = memref.load %arg1[%c24] : memref<32xf32, #tpu.memory_space<smem>>
    %c25 = arith.constant 25 : index
    %25 = memref.load %arg1[%c25] : memref<32xf32, #tpu.memory_space<smem>>
    %c26 = arith.constant 26 : index
    %26 = memref.load %arg1[%c26] : memref<32xf32, #tpu.memory_space<smem>>
    %c27 = arith.constant 27 : index
    %27 = memref.load %arg1[%c27] : memref<32xf32, #tpu.memory_space<smem>>
    %c28 = arith.constant 28 : index
    %28 = memref.load %arg1[%c28] : memref<32xf32, #tpu.memory_space<smem>>
    %c29 = arith.constant 29 : index
    %29 = memref.load %arg1[%c29] : memref<32xf32, #tpu.memory_space<smem>>
    %c30 = arith.constant 30 : index
    %30 = memref.load %arg1[%c30] : memref<32xf32, #tpu.memory_space<smem>>
    %c31 = arith.constant 31 : index
    %31 = memref.load %arg1[%c31] : memref<32xf32, #tpu.memory_space<smem>>
    %c0_0 = arith.constant 0 : index
    %32 = memref.load %arg2[%c0_0] : memref<1xf32, #tpu.memory_space<smem>>
    %c0_i32 = arith.constant 0 : i32
    %c128_i32 = arith.constant 128 : i32
    %33 = arith.muli %c0_i32, %c128_i32 : i32
    %34 = tpu.assume_multiple %33, 128 : i32
    %c0_1 = arith.constant 0 : index
    %35 = arith.index_cast %34 : i32 to index
    %36 = vector.load %arg3[%c0_1, %35] : memref<32x128xf32, #tpu.memory_space<vmem>>, vector<32x128xf32>
    %c0_2 = arith.constant 0 : index
    %37 = arith.index_cast %34 : i32 to index
    %38 = vector.load %arg4[%c0_2, %37] : memref<32x128xf32, #tpu.memory_space<vmem>>, vector<32x128xf32>
    %c0_3 = arith.constant 0 : index
    %39 = arith.index_cast %34 : i32 to index
    %40 = vector.load %arg5[%c0_3, %39] : memref<32x128xf32, #tpu.memory_space<vmem>>, vector<32x128xf32>
    %cst = arith.constant 0.000000e+00 : f32
    %41 = vector.broadcast %cst : f32 to vector<32x128xf32>
    %42 = vector.broadcast %0 : f32 to vector<32x128xf32>
    %43 = arith.mulf %36, %42 : vector<32x128xf32>
    %44 = vector.broadcast %8 : f32 to vector<32x128xf32>
    %45 = arith.mulf %38, %44 : vector<32x128xf32>
    %46 = arith.addf %43, %45 : vector<32x128xf32>
    %47 = vector.broadcast %16 : f32 to vector<32x128xf32>
    %48 = arith.mulf %40, %47 : vector<32x128xf32>
    %49 = arith.addf %46, %48 : vector<32x128xf32>
    %50 = vector.broadcast %24 : f32 to vector<32x128xf32>
    %51 = arith.addf %49, %50 : vector<32x128xf32>
    %cst_4 = arith.constant 0.000000e+00 : f32
    %52 = vector.broadcast %cst_4 : f32 to vector<32x128xf32>
    %53 = arith.maximumf %51, %52 : vector<32x128xf32>
    %c0_5 = arith.constant 0 : index
    %c0_6 = arith.constant 0 : index
    %c0_7 = arith.constant 0 : index
    %54 = vector.load %arg6[%c0_5, %c0_6, %c0_7] : memref<8x32x128xf32, #tpu.memory_space<vmem>>, vector<1x32x128xf32>
    %55 = vector.shape_cast %54 : vector<1x32x128xf32> to vector<32x128xf32>
    %56 = arith.mulf %53, %55 : vector<32x128xf32>
    %57 = arith.addf %41, %56 : vector<32x128xf32>
    %58 = vector.broadcast %1 : f32 to vector<32x128xf32>
    %59 = arith.mulf %36, %58 : vector<32x128xf32>
    %60 = vector.broadcast %9 : f32 to vector<32x128xf32>
    %61 = arith.mulf %38, %60 : vector<32x128xf32>
    %62 = arith.addf %59, %61 : vector<32x128xf32>
    %63 = vector.broadcast %17 : f32 to vector<32x128xf32>
    %64 = arith.mulf %40, %63 : vector<32x128xf32>
    %65 = arith.addf %62, %64 : vector<32x128xf32>
    %66 = vector.broadcast %25 : f32 to vector<32x128xf32>
    %67 = arith.addf %65, %66 : vector<32x128xf32>
    %cst_8 = arith.constant 0.000000e+00 : f32
    %68 = vector.broadcast %cst_8 : f32 to vector<32x128xf32>
    %69 = arith.maximumf %67, %68 : vector<32x128xf32>
    %c1_9 = arith.constant 1 : index
    %c0_10 = arith.constant 0 : index
    %c0_11 = arith.constant 0 : index
    %70 = vector.load %arg6[%c1_9, %c0_10, %c0_11] : memref<8x32x128xf32, #tpu.memory_space<vmem>>, vector<1x32x128xf32>
    %71 = vector.shape_cast %70 : vector<1x32x128xf32> to vector<32x128xf32>
    %72 = arith.mulf %69, %71 : vector<32x128xf32>
    %73 = arith.addf %57, %72 : vector<32x128xf32>
    %74 = vector.broadcast %2 : f32 to vector<32x128xf32>
    %75 = arith.mulf %36, %74 : vector<32x128xf32>
    %76 = vector.broadcast %10 : f32 to vector<32x128xf32>
    %77 = arith.mulf %38, %76 : vector<32x128xf32>
    %78 = arith.addf %75, %77 : vector<32x128xf32>
    %79 = vector.broadcast %18 : f32 to vector<32x128xf32>
    %80 = arith.mulf %40, %79 : vector<32x128xf32>
    %81 = arith.addf %78, %80 : vector<32x128xf32>
    %82 = vector.broadcast %26 : f32 to vector<32x128xf32>
    %83 = arith.addf %81, %82 : vector<32x128xf32>
    %cst_12 = arith.constant 0.000000e+00 : f32
    %84 = vector.broadcast %cst_12 : f32 to vector<32x128xf32>
    %85 = arith.maximumf %83, %84 : vector<32x128xf32>
    %c2_13 = arith.constant 2 : index
    %c0_14 = arith.constant 0 : index
    %c0_15 = arith.constant 0 : index
    %86 = vector.load %arg6[%c2_13, %c0_14, %c0_15] : memref<8x32x128xf32, #tpu.memory_space<vmem>>, vector<1x32x128xf32>
    %87 = vector.shape_cast %86 : vector<1x32x128xf32> to vector<32x128xf32>
    %88 = arith.mulf %85, %87 : vector<32x128xf32>
    %89 = arith.addf %73, %88 : vector<32x128xf32>
    %90 = vector.broadcast %3 : f32 to vector<32x128xf32>
    %91 = arith.mulf %36, %90 : vector<32x128xf32>
    %92 = vector.broadcast %11 : f32 to vector<32x128xf32>
    %93 = arith.mulf %38, %92 : vector<32x128xf32>
    %94 = arith.addf %91, %93 : vector<32x128xf32>
    %95 = vector.broadcast %19 : f32 to vector<32x128xf32>
    %96 = arith.mulf %40, %95 : vector<32x128xf32>
    %97 = arith.addf %94, %96 : vector<32x128xf32>
    %98 = vector.broadcast %27 : f32 to vector<32x128xf32>
    %99 = arith.addf %97, %98 : vector<32x128xf32>
    %cst_16 = arith.constant 0.000000e+00 : f32
    %100 = vector.broadcast %cst_16 : f32 to vector<32x128xf32>
    %101 = arith.maximumf %99, %100 : vector<32x128xf32>
    %c3_17 = arith.constant 3 : index
    %c0_18 = arith.constant 0 : index
    %c0_19 = arith.constant 0 : index
    %102 = vector.load %arg6[%c3_17, %c0_18, %c0_19] : memref<8x32x128xf32, #tpu.memory_space<vmem>>, vector<1x32x128xf32>
    %103 = vector.shape_cast %102 : vector<1x32x128xf32> to vector<32x128xf32>
    %104 = arith.mulf %101, %103 : vector<32x128xf32>
    %105 = arith.addf %89, %104 : vector<32x128xf32>
    %106 = vector.broadcast %4 : f32 to vector<32x128xf32>
    %107 = arith.mulf %36, %106 : vector<32x128xf32>
    %108 = vector.broadcast %12 : f32 to vector<32x128xf32>
    %109 = arith.mulf %38, %108 : vector<32x128xf32>
    %110 = arith.addf %107, %109 : vector<32x128xf32>
    %111 = vector.broadcast %20 : f32 to vector<32x128xf32>
    %112 = arith.mulf %40, %111 : vector<32x128xf32>
    %113 = arith.addf %110, %112 : vector<32x128xf32>
    %114 = vector.broadcast %28 : f32 to vector<32x128xf32>
    %115 = arith.addf %113, %114 : vector<32x128xf32>
    %cst_20 = arith.constant 0.000000e+00 : f32
    %116 = vector.broadcast %cst_20 : f32 to vector<32x128xf32>
    %117 = arith.maximumf %115, %116 : vector<32x128xf32>
    %c4_21 = arith.constant 4 : index
    %c0_22 = arith.constant 0 : index
    %c0_23 = arith.constant 0 : index
    %118 = vector.load %arg6[%c4_21, %c0_22, %c0_23] : memref<8x32x128xf32, #tpu.memory_space<vmem>>, vector<1x32x128xf32>
    %119 = vector.shape_cast %118 : vector<1x32x128xf32> to vector<32x128xf32>
    %120 = arith.mulf %117, %119 : vector<32x128xf32>
    %121 = arith.addf %105, %120 : vector<32x128xf32>
    %122 = vector.broadcast %5 : f32 to vector<32x128xf32>
    %123 = arith.mulf %36, %122 : vector<32x128xf32>
    %124 = vector.broadcast %13 : f32 to vector<32x128xf32>
    %125 = arith.mulf %38, %124 : vector<32x128xf32>
    %126 = arith.addf %123, %125 : vector<32x128xf32>
    %127 = vector.broadcast %21 : f32 to vector<32x128xf32>
    %128 = arith.mulf %40, %127 : vector<32x128xf32>
    %129 = arith.addf %126, %128 : vector<32x128xf32>
    %130 = vector.broadcast %29 : f32 to vector<32x128xf32>
    %131 = arith.addf %129, %130 : vector<32x128xf32>
    %cst_24 = arith.constant 0.000000e+00 : f32
    %132 = vector.broadcast %cst_24 : f32 to vector<32x128xf32>
    %133 = arith.maximumf %131, %132 : vector<32x128xf32>
    %c5_25 = arith.constant 5 : index
    %c0_26 = arith.constant 0 : index
    %c0_27 = arith.constant 0 : index
    %134 = vector.load %arg6[%c5_25, %c0_26, %c0_27] : memref<8x32x128xf32, #tpu.memory_space<vmem>>, vector<1x32x128xf32>
    %135 = vector.shape_cast %134 : vector<1x32x128xf32> to vector<32x128xf32>
    %136 = arith.mulf %133, %135 : vector<32x128xf32>
    %137 = arith.addf %121, %136 : vector<32x128xf32>
    %138 = vector.broadcast %6 : f32 to vector<32x128xf32>
    %139 = arith.mulf %36, %138 : vector<32x128xf32>
    %140 = vector.broadcast %14 : f32 to vector<32x128xf32>
    %141 = arith.mulf %38, %140 : vector<32x128xf32>
    %142 = arith.addf %139, %141 : vector<32x128xf32>
    %143 = vector.broadcast %22 : f32 to vector<32x128xf32>
    %144 = arith.mulf %40, %143 : vector<32x128xf32>
    %145 = arith.addf %142, %144 : vector<32x128xf32>
    %146 = vector.broadcast %30 : f32 to vector<32x128xf32>
    %147 = arith.addf %145, %146 : vector<32x128xf32>
    %cst_28 = arith.constant 0.000000e+00 : f32
    %148 = vector.broadcast %cst_28 : f32 to vector<32x128xf32>
    %149 = arith.maximumf %147, %148 : vector<32x128xf32>
    %c6_29 = arith.constant 6 : index
    %c0_30 = arith.constant 0 : index
    %c0_31 = arith.constant 0 : index
    %150 = vector.load %arg6[%c6_29, %c0_30, %c0_31] : memref<8x32x128xf32, #tpu.memory_space<vmem>>, vector<1x32x128xf32>
    %151 = vector.shape_cast %150 : vector<1x32x128xf32> to vector<32x128xf32>
    %152 = arith.mulf %149, %151 : vector<32x128xf32>
    %153 = arith.addf %137, %152 : vector<32x128xf32>
    %154 = vector.broadcast %7 : f32 to vector<32x128xf32>
    %155 = arith.mulf %36, %154 : vector<32x128xf32>
    %156 = vector.broadcast %15 : f32 to vector<32x128xf32>
    %157 = arith.mulf %38, %156 : vector<32x128xf32>
    %158 = arith.addf %155, %157 : vector<32x128xf32>
    %159 = vector.broadcast %23 : f32 to vector<32x128xf32>
    %160 = arith.mulf %40, %159 : vector<32x128xf32>
    %161 = arith.addf %158, %160 : vector<32x128xf32>
    %162 = vector.broadcast %31 : f32 to vector<32x128xf32>
    %163 = arith.addf %161, %162 : vector<32x128xf32>
    %cst_32 = arith.constant 0.000000e+00 : f32
    %164 = vector.broadcast %cst_32 : f32 to vector<32x128xf32>
    %165 = arith.maximumf %163, %164 : vector<32x128xf32>
    %c7_33 = arith.constant 7 : index
    %c0_34 = arith.constant 0 : index
    %c0_35 = arith.constant 0 : index
    %166 = vector.load %arg6[%c7_33, %c0_34, %c0_35] : memref<8x32x128xf32, #tpu.memory_space<vmem>>, vector<1x32x128xf32>
    %167 = vector.shape_cast %166 : vector<1x32x128xf32> to vector<32x128xf32>
    %168 = arith.mulf %165, %167 : vector<32x128xf32>
    %169 = arith.addf %153, %168 : vector<32x128xf32>
    %cst_36 = arith.constant dense<0.000000e+00> : vector<128xf32>
    %170 = vector.multi_reduction <add>, %169, %cst_36 [0] : vector<32x128xf32> to vector<128xf32>
    %171 = vector.shape_cast %170 : vector<128xf32> to vector<1x128xf32>
    %172 = vector.broadcast %32 : f32 to vector<1x128xf32>
    %173 = arith.addf %171, %172 : vector<1x128xf32>
    %c0_37 = arith.constant 0 : index
    %174 = arith.index_cast %34 : i32 to index
    %175 = vector.load %arg7[%c0_37, %174] : memref<1x128xf32, #tpu.memory_space<vmem>>, vector<1x128xf32>
    tpu.vector_store %arg7[%c0_37, %174], %173 {strides = array<i32>} : memref<1x128xf32, #tpu.memory_space<vmem>>, vector<1x128xf32>,
    %c1_i32 = arith.constant 1 : i32
    return
  }
  func.func @transform_0(%arg0: i32) -> i32 {
    %c0_i32 = arith.constant 0 : i32
    %c0_i32_0 = arith.constant 0 : i32
    return %c0_i32 : i32
  }
  func.func @transform_1(%arg0: i32) -> i32 {
    %c0_i32 = arith.constant 0 : i32
    %c0_i32_0 = arith.constant 0 : i32
    return %c0_i32 : i32
  }
  func.func @transform_2(%arg0: i32) -> (i32, i32) {
    %c0_i32 = arith.constant 0 : i32
    %c0_i32_0 = arith.constant 0 : i32
    return %c0_i32, %arg0 : i32, i32
  }
  func.func @transform_3(%arg0: i32) -> (i32, i32) {
    %c0_i32 = arith.constant 0 : i32
    %c0_i32_0 = arith.constant 0 : i32
    return %c0_i32, %arg0 : i32, i32
  }
  func.func @transform_4(%arg0: i32) -> (i32, i32) {
    %c0_i32 = arith.constant 0 : i32
    %c0_i32_0 = arith.constant 0 : i32
    return %c0_i32, %arg0 : i32, i32
  }
  func.func @transform_5(%arg0: i32) -> (i32, i32, i32) {
    %c0_i32 = arith.constant 0 : i32
    %c0_i32_0 = arith.constant 0 : i32
    %c0_i32_1 = arith.constant 0 : i32
    %c0_i32_2 = arith.constant 0 : i32
    return %c0_i32, %c0_i32_0, %c0_i32_1 : i32, i32, i32
  }
  func.func @transform_6(%arg0: i32) -> (i32, i32) {
    %c0_i32 = arith.constant 0 : i32
    %c0_i32_0 = arith.constant 0 : i32
    return %c0_i32, %arg0 : i32, i32
  }
}

</mosaic_0001>

<bundles_post_ra>
// kernel: tpu_custom_call.1
= control target key start
LH: loop header
LB: loop body
LE: loop exit
PB: predicated region body
PF: predicated region fallthrough
CT: control target
= control target key end

     0   :  { %12 = vsyncpa [#allocation6], 0  ;;  %s1054_s0 = inlined_call_operand.vmem [shape: f32[32], index: 0, kind: input, shape index: {}]   ;;  %s1055_s1 = inlined_call_operand.<no memory space> [shape: f32[1], index: 1, kind: input, shape index: {}]   ;;  %s1056_s2 = inlined_call_operand.hbm [shape: f32[32,128], index: 2, kind: input, shape index: {}]   ;;  %s1057_s3 = inlined_call_operand.hbm [shape: f32[32,128], index: 3, kind: input, shape index: {}]   ;;  %s1058_s4 = inlined_call_operand.hbm [shape: f32[32,128], index: 4, kind: input, shape index: {}]   ;;  %s1059_s5 = inlined_call_operand.hbm [shape: f32[8,32,128], index: 5, kind: input, shape index: {}]   ;;  %s1060_s6 = inlined_call_operand.hbm [shape: f32[1,128], index: 6, kind: output, shape index: {}]  }
   0x1   :  { %13 = vsyncpa [#allocation4], 0 }
   0x2   :  { %14 = vsyncpa [#allocation9], 0 }
   0x3   :  { %15 = vsyncpa [#allocation12], 0 }
   0x4   :  { %16 = vsyncpa [#allocation5], 0  ;;  %s23_s23 = sshll.u32 %s1054_s0, 4  ;;  %s698_s24 = smov [#allocation8]   ;;  %s24_s23 = int_to_ptr.vmem [resolvable:$true] %s23_s23 }
   0x5   :  { %s46_s25 = sshll.u32 %s698_s24, 4  ;;  %s566_s28 = scalar_lea.hbm %s1057_s3, 512  ;;  %s47_s25 = int_to_ptr.vmem [resolvable:$true] %s46_s25 }
   0x6   :  { %p567_p0 = scmp.ne.s32.totalorder %s1057_s3, %s566_s28  ;;  %p570_p1 = scmp.lt.u32.totalorder %s566_s28, %s1057_s3 }
   0x8   :  { %p572_p2 = pnand %p570_p1, %p567_p0 }
   0xa   :  { %575 = shalt.err (!%p572_p2)
}
   0xb   :  { %s576_s9 = scalar_lea.vmem %s47_s25, 512  ;;  %p581_p4 = scmp.lt.s32.totalorder %s47_s25, %s47_s25 }
   0xc   :  { %p577_p3 = scmp.ne.s32.totalorder %s47_s25, %s576_s9  ;;  %p582_p5 = scmp.lt.s32.totalorder %s576_s9, %s576_s9 }
   0xe   :  { %p583_p6 = por %p582_p5, %p581_p4 }
  0x10   :  { %p584_p7 = pnand %p583_p6, %p577_p3 }
  0x12   :  { %587 = shalt.err (!%p584_p7)
}
  0x13   :  { %s699_s0 = smov 128   ;;  %s700_s10 = smov 8  }
  0x14   :  { %52 = dma.hbm_to_vmem [thread:$0]  %s1057_s3, 512, %s47_s25, [#allocation9], %s699_s0, %s699_s0, %s700_s10  }
  0x15   :  { %s588_s13 = scalar_lea.vmem %s24_s23, 16  ;;  %p593_p9 = scmp.lt.s32.totalorder %s24_s23, %s24_s23 }
  0x16   :  { %p589_p8 = scmp.ne.s32.totalorder %s24_s23, %s588_s13  ;;  %p594_p10 = scmp.lt.s32.totalorder %s588_s13, %s588_s13 }
  0x18   :  { %p595_p11 = por %p594_p10, %p593_p9 }
  0x1a   :  { %p596_p12 = pnand %p595_p11, %p589_p8 }
  0x1c   :  { %599 = shalt.err (!%p596_p12)
}
  0x1d   :  { %s701_s14 = smov [#allocation3]   ;;  %s702_s15 = smov [#allocation7]  }
  0x1e   :  { %26 = dma.vmem_to_smem %s24_s23, 16, %s701_s14, [#allocation6]  }
  0x1f   :  { %s34_s16 = sshll.u32 %s702_s15, 4  ;;  %s703_s17 = smov [#allocation10]   ;;  %s35_s16 = int_to_ptr.vmem [resolvable:$true] %s34_s16 }
  0x20   :  { %s58_s18 = sshll.u32 %s703_s17, 4  ;;  %s600_s3 = scalar_lea.hbm %s1056_s2, 512  ;;  %s759_s18 = int_to_ptr.vmem [resolvable:$true] %s58_s18 }
  0x21   :  { %p601_p13 = scmp.ne.s32.totalorder %s1056_s2, %s600_s3  ;;  %p604_p0 = scmp.lt.u32.totalorder %s600_s3, %s1056_s2 }
  0x23   :  { %p606_p1 = pnand %p604_p0, %p601_p13 }
  0x25   :  { %609 = shalt.err (!%p606_p1)
}
  0x26   :  { %s610_s23 = scalar_lea.vmem %s35_s16, 512  ;;  %p615_p3 = scmp.lt.s32.totalorder %s35_s16, %s35_s16 }
  0x27   :  { %p611_p2 = scmp.ne.s32.totalorder %s35_s16, %s610_s23  ;;  %p616_p4 = scmp.lt.s32.totalorder %s610_s23, %s610_s23 }
  0x29   :  { %p617_p5 = por %p616_p4, %p615_p3 }
  0x2b   :  { %p618_p6 = pnand %p617_p5, %p611_p2 }
  0x2d   :  { %621 = shalt.err (!%p618_p6)
}
  0x2e   :  { %40 = dma.hbm_to_vmem [thread:$0]  %s1056_s2, 512, %s35_s16, [#allocation4], %s699_s0, %s699_s0, %s700_s10  }
  0x2f   :  { %s622_s30 = scalar_lea.hbm %s1058_s4, 512 }
  0x30   :  { %p623_p7 = scmp.ne.s32.totalorder %s1058_s4, %s622_s30  ;;  %p626_p8 = scmp.lt.u32.totalorder %s622_s30, %s1058_s4 }
  0x32   :  { %p628_p9 = pnand %p626_p8, %p623_p7 }
  0x34   :  { %631 = shalt.err (!%p628_p9)
}
  0x35   :  { %s632_s12 = scalar_lea.vmem %s759_s18, 512  ;;  %p637_p11 = scmp.lt.s32.totalorder %s759_s18, %s759_s18 }
  0x36   :  { %p633_p10 = scmp.ne.s32.totalorder %s759_s18, %s632_s12  ;;  %p638_p12 = scmp.lt.s32.totalorder %s632_s12, %s632_s12 }
  0x38   :  { %p639_p13 = por %p638_p12, %p637_p11 }
  0x3a   :  { %p640_p0 = pnand %p639_p13, %p633_p10 }
  0x3c   :  { %643 = shalt.err (!%p640_p0)
}
  0x3d   :  { %64 = dma.hbm_to_vmem [thread:$0]  %s1058_s4, 512, %s759_s18, [#allocation9], %s699_s0, %s699_s0, %s700_s10  }
  0x3e   :  { %s704_s14 = smov [#allocation11]   ;;  %s644_s19 = scalar_lea.hbm %s1059_s5, 4096 }
  0x3f   :  { %s70_s15 = sshll.u32 %s704_s14, 4  ;;  %p645_p1 = scmp.ne.s32.totalorder %s1059_s5, %s644_s19  ;;  %s71_s15 = int_to_ptr.vmem [resolvable:$true] %s70_s15 }
  0x40   :  { %p648_p2 = scmp.lt.u32.totalorder %s644_s19, %s1059_s5 }
  0x42   :  { %p650_p3 = pnand %p648_p2, %p645_p1 }
  0x44   :  { %653 = shalt.err (!%p650_p3)
}
  0x45   :  { %s654_s24 = scalar_lea.vmem %s71_s15, 4096  ;;  %p659_p5 = scmp.lt.s32.totalorder %s71_s15, %s71_s15 }
  0x46   :  { %p655_p4 = scmp.ne.s32.totalorder %s71_s15, %s654_s24  ;;  %p660_p6 = scmp.lt.s32.totalorder %s654_s24, %s654_s24 }
  0x48   :  { %p661_p7 = por %p660_p6, %p659_p5 }
  0x4a   :  { %p662_p8 = pnand %p661_p7, %p655_p4 }
  0x4c   :  { %665 = shalt.err (!%p662_p8)
}
  0x4d   :  { %76 = dma.hbm_to_vmem [thread:$0]  %s1059_s5, 4096, %s71_s15, [#allocation12], %s699_s0, %s699_s0, %s700_s10  }
  0x4e   :  { %688 = dma.done.wait [#allocation6], 16  }
  0x4f   :  { %689 = vsyncadd [#allocation6], 4294967280 }
  0x50   :  { %690 = dma.done.wait [#allocation4], 512  }
  0x51   :  { %691 = vsyncadd [#allocation4], 4294966784 }
  0x52   :  { %692 = dma.done.wait [#allocation9], 1024  }
  0x53   :  { %693 = vsyncadd [#allocation9], 4294966272 }
  0x54   :  { %694 = dma.done.wait [#allocation12], 4096  }
  0x55   :  { %695 = vsyncadd [#allocation12], 4294963200 }
  0x56   :  { %92 = sfence }
  0x57   :  { %s93_s25 = sld [smem:[#allocation3]]  ;;  %s527_s23 = sld [smem:[#allocation3 + $0x1]]  ;;  %v811_v0 = vld [vmem:[#allocation7] sm:$0xff]  ;;  %v813_v1 = vld [vmem:[#allocation7 + $0x8] sm:$0xff]  ;;  %v815_v2 = vld [vmem:[#allocation7 + $0x10] sm:$0xff] }
  0x58   :  { %s534_s26 = sld [smem:[#allocation3 + $0x8]]  ;;  %s535_s27 = sld [smem:[#allocation3 + $0x9]]  ;;  %v817_v3 = vld [vmem:[#allocation7 + $0x18] sm:$0xff]  ;;  %v819_v5 = vld [vmem:[#allocation8] sm:$0xff]  ;;  %v821_v6 = vld [vmem:[#allocation8 + $0x8] sm:$0xff] }
  0x59   :  { %s823_s5 = sld [smem:[#allocation3 + $0x10]]  ;;  %s825_s0 = sld [smem:[#allocation3 + $0x11]]  ;;  %v827_v8 = vld [vmem:[#allocation8 + $0x10] sm:$0xff]  ;;  %v829_v9 = vld [vmem:[#allocation8 + $0x18] sm:$0xff]  ;;  %v841_v18 = vld [vmem:[#allocation10] sm:$0xff] }
  0x5a   :  { %s831_s10 = sld [smem:[#allocation3 + $0x2]]  ;;  %s839_s28 = sld [smem:[#allocation3 + $0x3]]  ;;  %v849_v23 = vld [vmem:[#allocation10 + $0x8] sm:$0xff]  ;;  %v851_v24 = vld [vmem:[#allocation10 + $0x10] sm:$0xff]  ;;  %v853_v25 = vld [vmem:[#allocation10 + $0x18] sm:$0xff] }
  0x5b   :  { %s847_s29 = sld [smem:[#allocation3 + $0x18]]  ;;  %s859_s30 = sld [smem:[#allocation3 + $0x4]] }
  0x5c   :  { %s861_s7 = sld [smem:[#allocation3 + $0x5]]  ;;  %s865_s8 = sld [smem:[#allocation3 + $0xa]] }
  0x5d   :  { %v138_v4 = vstv %s93_s25  ;;  %v182_v7 = vstv %s527_s23  ;;  %s867_s9 = sld [smem:[#allocation3 + $0x19]]  ;;  %s876_s11 = sld [smem:[#allocation3 + $0x12]] }
  0x5e   :  { %v139_v10 = vmul.f32 %v138_v4, %v811_v0  ;;  %v140_v11 = vmul.f32 %v138_v4, %v813_v1  ;;  %v141_v12 = vmul.f32 %v138_v4, %v815_v2  ;;  %v142_v13 = vmul.f32 %v138_v4, %v817_v3  ;;  %s898_s12 = sld [smem:[#allocation3 + $0x1a]]  ;;  %s904_s2 = sld [smem:[#allocation3 + $0xb]] }
  0x5f   :  { %v143_v14 = vstv %s534_s26  ;;  %v183_v15 = vmul.f32 %v182_v7, %v811_v0  ;;  %v184_v16 = vmul.f32 %v182_v7, %v813_v1  ;;  %v187_v17 = vstv %s535_s27  ;;  %s907_s13 = sld [smem:[#allocation3 + $0x13]]  ;;  %s925_s15 = sld [smem:[#allocation3 + $0xc]] }
  0x60   :  { %v144_v19 = vmul.f32 %v143_v14, %v819_v5  ;;  %v145_v20 = vmul.f32 %v143_v14, %v821_v6  ;;  %v146_v21 = vmul.f32 %v143_v14, %v827_v8  ;;  %v147_v22 = vmul.f32 %v143_v14, %v829_v9  ;;  %s914_s14 = sld [smem:[#allocation3 + $0x1b]]  ;;  %s932_s16 = sld [smem:[#allocation3 + $0x14]] }
  0x61   :  { %v185_v26 = vmul.f32 %v182_v7, %v815_v2  ;;  %v188_v27 = vmul.f32 %v187_v17, %v819_v5  ;;  %v189_v28 = vmul.f32 %v187_v17, %v821_v6  ;;  %v190_v29 = vmul.f32 %v187_v17, %v827_v8  ;;  %s943_s17 = sld [smem:[#allocation3 + $0x1c]]  ;;  %s952_s19 = sld [smem:[#allocation3 + $0xd]] }
  0x62   :  { %v148_v30 = vadd.f32 %v144_v19, %v139_v10  ;;  %v149_v31 = vadd.f32 %v145_v20, %v140_v11  ;;  %v186_v32 = vmul.f32 %v182_v7, %v817_v3  ;;  %v191_v33 = vmul.f32 %v187_v17, %v829_v9  ;;  %s965_s20 = sld [smem:[#allocation3 + $0x6]]  ;;  %s967_s3 = sld [smem:[#allocation3 + $0x15]] }
  0x63   :  { %v150_v34 = vadd.f32 %v146_v21, %v141_v12  ;;  %v151_v35 = vadd.f32 %v147_v22, %v142_v13  ;;  %v152_v36 = vstv %s823_s5  ;;  %v192_v41 = vadd.f32 %v188_v27, %v183_v15  ;;  %s972_s21 = sld [smem:[#allocation3 + $0xe]]  ;;  %s977_s22 = sld [smem:[#allocation3 + $0x1d]] }
  0x64   :  { %v153_v37 = vmul.f32 %v152_v36, %v841_v18  ;;  %v154_v38 = vmul.f32 %v152_v36, %v849_v23  ;;  %v155_v39 = vmul.f32 %v152_v36, %v851_v24  ;;  %v156_v40 = vmul.f32 %v152_v36, %v853_v25  ;;  %s990_s24 = sld [smem:[#allocation3 + $0x16]]  ;;  %s993_s4 = sld [smem:[#allocation3 + $0x7]] }
  0x65   :  { %v193_v42 = vadd.f32 %v189_v28, %v184_v16  ;;  %v194_v43 = vadd.f32 %v190_v29, %v185_v26  ;;  %v196_v44 = vstv %s825_s0  ;;  %v195_v47 = vadd.f32 %v191_v33, %v186_v32  ;;  %v170_v33 = vld [vmem:[#allocation11] sm:$0xff]  ;;  %s1003_s18 = sld [smem:[#allocation3 + $0xf]]  ;;  %s1005_s25 = sld [smem:[#allocation3 + $0x1e]] }
  0x66   :  { %v157_v45 = vadd.f32 %v153_v37, %v148_v30  ;;  %v158_v46 = vadd.f32 %v154_v38, %v149_v31  ;;  %v227_v48 = vstv %s831_s10  ;;  %v161_v49 = vstv %s847_s29  ;;  %s1019_s23 = sld [smem:[#allocation3 + $0x17]]  ;;  %s705_s0 = smov [#allocation13]  }
  0x67   :  { %v197_v50 = vmul.f32 %v196_v44, %v841_v18  ;;  %v198_v51 = vmul.f32 %v196_v44, %v849_v23  ;;  %v199_v52 = vmul.f32 %v196_v44, %v851_v24  ;;  %v159_v53 = vadd.f32 %v155_v39, %v150_v34  ;;  %v171_v34 = vld [vmem:[#allocation11 + $0x8] sm:$0xff]  ;;  %s1026_s26 = sld [smem:[#allocation3 + $0x1f]]  ;;  %s515_s10 = sshll.u32 %s705_s0, 4  ;;  %s516_s10 = int_to_ptr.vmem [resolvable:$true] %s515_s10 }
  0x68   :  { %v160_v54 = vadd.f32 %v156_v40, %v151_v35  ;;  %v162_v55 = vadd.f32 %v161_v49, %v157_v45  ;;  %v883_v56 = vstv %s839_s28  ;;  %v200_v57 = vmul.f32 %v196_v44, %v853_v25  ;;  %v215_v35 = vld [vmem:[#allocation11 + $0x20] sm:$0xff]  ;;  %v172_v44 = vld [vmem:[#allocation11 + $0x10] sm:$0xff]  ;;  %v173_v45 = vld [vmem:[#allocation11 + $0x18] sm:$0xff]  ;;  %s666_s28 = scalar_lea.vmem %s516_s10, 16  ;;  %s670_s29 = scalar_lea.vmem %s516_s10, 32 }
  0x69   :  { %v201_v58 = vadd.f32 %v197_v50, %v192_v41  ;;  %v202_v59 = vadd.f32 %v198_v51, %v193_v42  ;;  %v203_v60 = vadd.f32 %v199_v52, %v194_v43  ;;  %v228_v61 = vmul.f32 %v227_v48, %v811_v0  ;;  %p667_p9 = scmp.ne.s32.totalorder %s516_s10, %s666_s28  ;;  %p671_p10 = scmp.lt.s32.totalorder %s516_s10, %s516_s10 }
  0x6a   :  { %v229_v62 = vmul.f32 %v227_v48, %v813_v1  ;;  %v889_v63 = vstv %s859_s30  ;;  %v892_v4 = vstv %s861_s7  ;;  %v163_v7 = vadd.f32 %v161_v49, %v158_v46  ;;  %v216_v46 = vld [vmem:[#allocation11 + $0x28] sm:$0xff]  ;;  %p672_p11 = scmp.lt.s32.totalorder %s670_s29, %s666_s28 }
  0x6b   :  { %v204_v10 = vadd.f32 %v200_v57, %v195_v47  ;;  %v205_v11 = vstv %s867_s9  ;;  %v232_v12 = vstv %s865_s8  ;;  %v164_v13 = vadd.f32 %v161_v49, %v159_v53 }
  0x6c   :  { %v165_v14 = vadd.f32 %v161_v49, %v160_v54  ;;  %v230_v15 = vmul.f32 %v227_v48, %v815_v2  ;;  %v231_v16 = vmul.f32 %v227_v48, %v817_v3  ;;  %v166_v17 = vmax.f32 %v162_v55, 0.0  ;;  %v217_v54 = vld [vmem:[#allocation11 + $0x30] sm:$0xff]  ;;  %p673_p12 = por %p672_p11, %p671_p10 }
  0x6d   :  { %v206_v19 = vadd.f32 %v205_v11, %v201_v58  ;;  %v207_v20 = vadd.f32 %v205_v11, %v202_v59  ;;  %v208_v21 = vadd.f32 %v205_v11, %v203_v60  ;;  %v233_v22 = vmul.f32 %v232_v12, %v819_v5 }
  0x6e   :  { %v234_v26 = vmul.f32 %v232_v12, %v821_v6  ;;  %v235_v27 = vmul.f32 %v232_v12, %v827_v8  ;;  %v236_v28 = vmul.f32 %v232_v12, %v829_v9  ;;  %v167_v29 = vmax.f32 %v163_v7, 0.0  ;;  %v218_v7 = vld [vmem:[#allocation11 + $0x38] sm:$0xff]  ;;  %p674_p13 = pnand %p673_p12, %p667_p9 }
  0x6f   :  { %v209_v30 = vadd.f32 %v205_v11, %v204_v10  ;;  %v210_v31 = vmax.f32 %v206_v19, 0.0  ;;  %v241_v32 = vstv %s876_s11  ;;  %v237_v36 = vadd.f32 %v233_v22, %v228_v61 }
  0x70   :  { %v238_v37 = vadd.f32 %v234_v26, %v229_v62  ;;  %v239_v38 = vadd.f32 %v235_v27, %v230_v15  ;;  %v240_v39 = vadd.f32 %v236_v28, %v231_v16  ;;  %v168_v40 = vmax.f32 %v164_v13, 0.0 }
  0x71   :  { %v169_v41 = vmax.f32 %v165_v14, 0.0  ;;  %v211_v42 = vmax.f32 %v207_v20, 0.0  ;;  %v212_v43 = vmax.f32 %v208_v21, 0.0  ;;  %v242_v47 = vmul.f32 %v241_v32, %v841_v18 }
  0x72   :  { %v243_v48 = vmul.f32 %v241_v32, %v849_v23  ;;  %v244_v49 = vmul.f32 %v241_v32, %v851_v24  ;;  %v245_v50 = vmul.f32 %v241_v32, %v853_v25  ;;  %v174_v51 = vmul.f32 %v170_v33, %v166_v17 }
  0x73   :  { %v175_v52 = vmul.f32 %v171_v34, %v167_v29  ;;  %v213_v53 = vmax.f32 %v209_v30, 0.0  ;;  %v219_v55 = vmul.f32 %v215_v35, %v210_v31  ;;  %v246_v57 = vadd.f32 %v242_v47, %v237_v36  ;;  %v261_v36 = vld [vmem:[#allocation11 + $0x48] sm:$0xff] }
  0x74   :  { %v247_v58 = vadd.f32 %v243_v48, %v238_v37  ;;  %v248_v59 = vadd.f32 %v244_v49, %v239_v38  ;;  %v249_v60 = vadd.f32 %v245_v50, %v240_v39  ;;  %v176_v61 = vmul.f32 %v172_v44, %v168_v40  ;;  %v262_v49 = vld [vmem:[#allocation11 + $0x50] sm:$0xff]  ;;  %v263_v50 = vld [vmem:[#allocation11 + $0x58] sm:$0xff] }
  0x75   :  { %v177_v62 = vmul.f32 %v173_v45, %v169_v41  ;;  %v220_v10 = vmul.f32 %v216_v46, %v211_v42  ;;  %v250_v11 = vstv %s898_s12  ;;  %v221_v12 = vmul.f32 %v217_v54, %v212_v43 }
  0x76   :  { %v251_v13 = vadd.f32 %v250_v11, %v246_v57  ;;  %v252_v14 = vadd.f32 %v250_v11, %v247_v58  ;;  %v273_v15 = vmul.f32 %v883_v56, %v811_v0  ;;  %v274_v16 = vmul.f32 %v883_v56, %v813_v1 }
  0x77   :  { %v275_v17 = vmul.f32 %v883_v56, %v815_v2  ;;  %v276_v19 = vmul.f32 %v883_v56, %v817_v3  ;;  %v277_v20 = vstv %s904_s2  ;;  %v222_v21 = vmul.f32 %v218_v7, %v213_v53  ;;  %v260_v56 = vld [vmem:[#allocation11 + $0x40] sm:$0xff] }
  0x78   :  { %v223_v22 = vadd.f32 %v219_v55, %v174_v51  ;;  %v253_v26 = vadd.f32 %v250_v11, %v248_v59  ;;  %v254_v27 = vadd.f32 %v250_v11, %v249_v60  ;;  %v278_v28 = vmul.f32 %v277_v20, %v819_v5 }
  0x79   :  { %v279_v29 = vmul.f32 %v277_v20, %v821_v6  ;;  %v280_v30 = vmul.f32 %v277_v20, %v827_v8  ;;  %v281_v31 = vmul.f32 %v277_v20, %v829_v9  ;;  %v224_v32 = vadd.f32 %v220_v10, %v175_v52 }
  0x7a   :  { %v255_v33 = vmax.f32 %v251_v13, 0.0  ;;  %v256_v34 = vmax.f32 %v252_v14, 0.0  ;;  %v286_v35 = vstv %s907_s13  ;;  %v282_v37 = vadd.f32 %v278_v28, %v273_v15 }
  0x7b   :  { %v283_v38 = vadd.f32 %v279_v29, %v274_v16  ;;  %v284_v39 = vadd.f32 %v280_v30, %v275_v17  ;;  %v285_v40 = vadd.f32 %v281_v31, %v276_v19  ;;  %v225_v41 = vadd.f32 %v221_v12, %v176_v61 }
  0x7c   :  { %v934_v42 = vadd.f32 %v222_v21, %v177_v62  ;;  %v257_v43 = vmax.f32 %v253_v26, 0.0  ;;  %v258_v44 = vmax.f32 %v254_v27, 0.0  ;;  %v287_v45 = vmul.f32 %v286_v35, %v841_v18 }
  0x7d   :  { %v288_v46 = vmul.f32 %v286_v35, %v849_v23  ;;  %v289_v47 = vmul.f32 %v286_v35, %v851_v24  ;;  %v290_v48 = vmul.f32 %v286_v35, %v853_v25  ;;  %v264_v51 = vmul.f32 %v260_v56, %v255_v33  ;;  %v305_v35 = vld [vmem:[#allocation11 + $0x60] sm:$0xff]  ;;  %v306_v56 = vld [vmem:[#allocation11 + $0x68] sm:$0xff] }
  0x7e   :  { %v265_v52 = vmul.f32 %v261_v36, %v256_v34  ;;  %v295_v53 = vstv %s914_s14  ;;  %v318_v54 = vmul.f32 %v889_v63, %v811_v0  ;;  %v291_v55 = vadd.f32 %v287_v45, %v282_v37 }
  0x7f   :  { %v292_v57 = vadd.f32 %v288_v46, %v283_v38  ;;  %v293_v58 = vadd.f32 %v289_v47, %v284_v39  ;;  %v294_v59 = vadd.f32 %v290_v48, %v285_v40  ;;  %v319_v60 = vmul.f32 %v889_v63, %v813_v1 }
  0x80   :  { %v320_v61 = vmul.f32 %v889_v63, %v815_v2  ;;  %v321_v62 = vmul.f32 %v889_v63, %v817_v3  ;;  %v322_v7 = vstv %s925_s15  ;;  %v266_v10 = vmul.f32 %v262_v49, %v257_v43 }
  0x81   :  { %v267_v11 = vmul.f32 %v263_v50, %v258_v44  ;;  %v296_v12 = vadd.f32 %v295_v53, %v291_v55  ;;  %v297_v13 = vadd.f32 %v295_v53, %v292_v57  ;;  %v323_v14 = vmul.f32 %v322_v7, %v819_v5 }
  0x82   :  { %v324_v15 = vmul.f32 %v322_v7, %v821_v6  ;;  %v325_v16 = vmul.f32 %v322_v7, %v827_v8  ;;  %v326_v17 = vmul.f32 %v322_v7, %v829_v9  ;;  %v268_v19 = vadd.f32 %v264_v51, %v223_v22  ;;  %v307_v51 = vld [vmem:[#allocation11 + $0x70] sm:$0xff] }
  0x83   :  { %v298_v20 = vadd.f32 %v295_v53, %v293_v58  ;;  %v299_v21 = vadd.f32 %v295_v53, %v294_v59  ;;  %v331_v26 = vstv %s932_s16  ;;  %v327_v63 = vadd.f32 %v323_v14, %v318_v54 }
  0x84   :  { %v328_v27 = vadd.f32 %v324_v15, %v319_v60  ;;  %v329_v28 = vadd.f32 %v325_v16, %v320_v61  ;;  %v330_v29 = vadd.f32 %v326_v17, %v321_v62  ;;  %v269_v30 = vadd.f32 %v265_v52, %v224_v32  ;;  %v308_v52 = vld [vmem:[#allocation11 + $0x78] sm:$0xff]  ;;  %v350_v17 = vld [vmem:[#allocation11 + $0x80] sm:$0xff] }
  0x85   :  { %v959_v31 = vadd.f32 %v266_v10, %v225_v41  ;;  %v300_v33 = vmax.f32 %v296_v12, 0.0  ;;  %v301_v34 = vmax.f32 %v297_v13, 0.0  ;;  %v332_v36 = vmul.f32 %v331_v26, %v841_v18 }
  0x86   :  { %v333_v37 = vmul.f32 %v331_v26, %v849_v23  ;;  %v334_v22 = vmul.f32 %v331_v26, %v851_v24  ;;  %v335_v38 = vmul.f32 %v331_v26, %v853_v25  ;;  %v302_v32 = vmax.f32 %v298_v20, 0.0  ;;  %v351_v20 = vld [vmem:[#allocation11 + $0x88] sm:$0xff] }
  0x87   :  { %v303_v39 = vmax.f32 %v299_v21, 0.0  ;;  %v340_v40 = vstv %s943_s17  ;;  %v363_v41 = vmul.f32 %v892_v4, %v811_v0  ;;  %v336_v43 = vadd.f32 %v332_v36, %v327_v63 }
  0x88   :  { %v337_v44 = vadd.f32 %v333_v37, %v328_v27  ;;  %v338_v45 = vadd.f32 %v334_v22, %v329_v28  ;;  %v339_v46 = vadd.f32 %v335_v38, %v330_v29  ;;  %v309_v47 = vmul.f32 %v305_v35, %v300_v33  ;;  %v352_v37 = vld [vmem:[#allocation11 + $0x90] sm:$0xff] }
  0x89   :  { %v310_v48 = vmul.f32 %v306_v56, %v301_v34  ;;  %v364_v49 = vmul.f32 %v892_v4, %v813_v1  ;;  %v367_v50 = vstv %s952_s19  ;;  %v341_v53 = vadd.f32 %v340_v40, %v336_v43 }
  0x8a   :  { %v342_v54 = vadd.f32 %v340_v40, %v337_v44  ;;  %v343_v55 = vadd.f32 %v340_v40, %v338_v45  ;;  %v344_v57 = vadd.f32 %v340_v40, %v339_v46  ;;  %v365_v58 = vmul.f32 %v892_v4, %v815_v2  ;;  %v353_v40 = vld [vmem:[#allocation11 + $0x98] sm:$0xff] }
  0x8b   :  { %v368_v59 = vmul.f32 %v367_v50, %v819_v5  ;;  %v369_v60 = vmul.f32 %v367_v50, %v821_v6  ;;  %v370_v61 = vmul.f32 %v367_v50, %v827_v8  ;;  %v345_v62 = vmax.f32 %v341_v53, 0.0 }
  0x8c   :  { %v346_v7 = vmax.f32 %v342_v54, 0.0  ;;  %v366_v10 = vmul.f32 %v892_v4, %v817_v3  ;;  %v371_v12 = vmul.f32 %v367_v50, %v829_v9  ;;  %v271_v13 = vadd.f32 %v267_v11, %v934_v42 }
  0x8d   :  { %v311_v14 = vmul.f32 %v307_v51, %v302_v32  ;;  %v312_v15 = vmul.f32 %v308_v52, %v303_v39  ;;  %v313_v16 = vadd.f32 %v309_v47, %v268_v19  ;;  %v314_v21 = vadd.f32 %v310_v48, %v269_v30 }
  0x8e   :  { %v347_v26 = vmax.f32 %v343_v55, 0.0  ;;  %v348_v63 = vmax.f32 %v344_v57, 0.0  ;;  %v372_v27 = vadd.f32 %v368_v59, %v363_v41  ;;  %v373_v28 = vadd.f32 %v369_v60, %v364_v49 }
  0x8f   :  { %v374_v29 = vadd.f32 %v370_v61, %v365_v58  ;;  %v376_v33 = vstv %s967_s3  ;;  %v407_v34 = vstv %s965_s20  ;;  %v354_v4 = vmul.f32 %v350_v17, %v345_v62 }
  0x90   :  { %v355_v35 = vmul.f32 %v351_v20, %v346_v7  ;;  %v375_v42 = vadd.f32 %v371_v12, %v366_v10  ;;  %v412_v11 = vstv %s972_s21  ;;  %v377_v19 = vmul.f32 %v376_v33, %v841_v18 }
  0x91   :  { %v378_v30 = vmul.f32 %v376_v33, %v849_v23  ;;  %v379_v56 = vmul.f32 %v376_v33, %v851_v24  ;;  %v380_v36 = vmul.f32 %v376_v33, %v853_v25  ;;  %v385_v22 = vstv %s977_s22 }
  0x92   :  { %v408_v38 = vmul.f32 %v407_v34, %v811_v0  ;;  %v409_v32 = vmul.f32 %v407_v34, %v813_v1  ;;  %v410_v39 = vmul.f32 %v407_v34, %v815_v2  ;;  %v381_v41 = vadd.f32 %v377_v19, %v372_v27  ;;  %v397_v19 = vld [vmem:[#allocation11 + $0xb0] sm:$0xff] }
  0x93   :  { %v382_v43 = vadd.f32 %v378_v30, %v373_v28  ;;  %v383_v44 = vadd.f32 %v379_v56, %v374_v29  ;;  %v411_v45 = vmul.f32 %v407_v34, %v817_v3  ;;  %v413_v46 = vmul.f32 %v412_v11, %v819_v5 }
  0x94   :  { %v414_v47 = vmul.f32 %v412_v11, %v821_v6  ;;  %v415_v48 = vmul.f32 %v412_v11, %v827_v8  ;;  %v416_v49 = vmul.f32 %v412_v11, %v829_v9  ;;  %v315_v50 = vadd.f32 %v311_v14, %v959_v31  ;;  %v396_v11 = vld [vmem:[#allocation11 + $0xa8] sm:$0xff] }
  0x95   :  { %v356_v51 = vmul.f32 %v352_v37, %v347_v26  ;;  %v384_v52 = vadd.f32 %v380_v36, %v375_v42  ;;  %v386_v53 = vadd.f32 %v385_v22, %v381_v41  ;;  %v316_v54 = vadd.f32 %v312_v15, %v271_v13  ;;  %v395_v42 = vld [vmem:[#allocation11 + $0xa0] sm:$0xff]  ;;  %v398_v37 = vld [vmem:[#allocation11 + $0xb8] sm:$0xff] }
  0x96   :  { %v357_v55 = vmul.f32 %v353_v40, %v348_v63  ;;  %v358_v57 = vadd.f32 %v354_v4, %v313_v16  ;;  %v359_v58 = vadd.f32 %v355_v35, %v314_v21  ;;  %v387_v59 = vadd.f32 %v385_v22, %v382_v43 }
  0x97   :  { %v388_v60 = vadd.f32 %v385_v22, %v383_v44  ;;  %v417_v61 = vadd.f32 %v413_v46, %v408_v38  ;;  %v418_v62 = vadd.f32 %v414_v47, %v409_v32  ;;  %v419_v7 = vadd.f32 %v415_v48, %v410_v39 }
  0x98   :  { %v420_v10 = vadd.f32 %v416_v49, %v411_v45  ;;  %v421_v12 = vstv %s990_s24  ;;  %v360_v17 = vadd.f32 %v356_v51, %v315_v50  ;;  %v389_v20 = vadd.f32 %v385_v22, %v384_v52  ;;  %v441_v52 = vld [vmem:[#allocation11 + $0xc8] sm:$0xff] }
  0x99   :  { %v390_v31 = vmax.f32 %v386_v53, 0.0  ;;  %v452_v14 = vstv %s993_s4  ;;  %v422_v26 = vmul.f32 %v421_v12, %v841_v18  ;;  %v423_v13 = vmul.f32 %v421_v12, %v849_v23 }
  0x9a   :  { %v424_v15 = vmul.f32 %v421_v12, %v851_v24  ;;  %v425_v16 = vmul.f32 %v421_v12, %v853_v25  ;;  %v391_v21 = vmax.f32 %v387_v59, 0.0  ;;  %v392_v63 = vmax.f32 %v388_v60, 0.0 }
  0x9b   :  { %v430_v27 = vstv %s1005_s25  ;;  %v457_v28 = vstv %s1003_s18  ;;  %v426_v29 = vadd.f32 %v422_v26, %v417_v61  ;;  %v427_v33 = vadd.f32 %v423_v13, %v418_v62 }
  0x9c   :  { %v428_v34 = vadd.f32 %v424_v15, %v419_v7  ;;  %v429_v4 = vadd.f32 %v425_v16, %v420_v10  ;;  %v393_v35 = vmax.f32 %v389_v20, 0.0  ;;  %v453_v30 = vmul.f32 %v452_v14, %v811_v0  ;;  %v443_v7 = vld [vmem:[#allocation11 + $0xd8] sm:$0xff] }
  0x9d   :  { %v454_v56 = vmul.f32 %v452_v14, %v813_v1  ;;  %v455_v36 = vmul.f32 %v452_v14, %v815_v2  ;;  %v431_v22 = vadd.f32 %v430_v27, %v426_v29  ;;  %v432_v38 = vadd.f32 %v430_v27, %v427_v33  ;;  %v486_v33 = vld [vmem:[#allocation11 + $0xe8] sm:$0xff] }
  0x9e   :  { %v433_v32 = vadd.f32 %v430_v27, %v428_v34  ;;  %v456_v39 = vmul.f32 %v452_v14, %v817_v3  ;;  %v458_v40 = vmul.f32 %v457_v28, %v819_v5  ;;  %v459_v41 = vmul.f32 %v457_v28, %v821_v6  ;;  %v440_v3 = vld [vmem:[#allocation11 + $0xc0] sm:$0xff]  ;;  %v442_v5 = vld [vmem:[#allocation11 + $0xd0] sm:$0xff]  ;;  %v488_v34 = vld [vmem:[#allocation11 + $0xf8] sm:$0xff] }
  0x9f   :  { %v460_v43 = vmul.f32 %v457_v28, %v827_v8  ;;  %v461_v0 = vmul.f32 %v457_v28, %v829_v9  ;;  %v399_v44 = vmul.f32 %v395_v42, %v390_v31  ;;  %v400_v1 = vmul.f32 %v396_v11, %v391_v21  ;;  %v485_v28 = vld [vmem:[#allocation11 + $0xe0] sm:$0xff] }
  0xa0   :  { %v401_v2 = vmul.f32 %v397_v19, %v392_v63  ;;  %v434_v45 = vadd.f32 %v430_v27, %v429_v4  ;;  %v361_v46 = vadd.f32 %v357_v55, %v316_v54  ;;  %v402_v47 = vmul.f32 %v398_v37, %v393_v35 }
  0xa1   :  { %v435_v48 = vmax.f32 %v431_v22, 0.0  ;;  %v436_v49 = vmax.f32 %v432_v38, 0.0  ;;  %v437_v50 = vmax.f32 %v433_v32, 0.0  ;;  %v462_v51 = vadd.f32 %v458_v40, %v453_v30 }
  0xa2   :  { %v463_v53 = vadd.f32 %v459_v41, %v454_v56  ;;  %v464_v6 = vadd.f32 %v460_v43, %v455_v36  ;;  %v465_v8 = vadd.f32 %v461_v0, %v456_v39  ;;  %v466_v59 = vstv %s1019_s23 }
  0xa3   :  { %v403_v9 = vadd.f32 %v399_v44, %v358_v57  ;;  %v404_v60 = vadd.f32 %v400_v1, %v359_v58  ;;  %v405_v61 = vadd.f32 %v401_v2, %v360_v17  ;;  %v438_v62 = vmax.f32 %v434_v45, 0.0 }
  0xa4   :  { %v467_v54 = vmul.f32 %v466_v59, %v841_v18  ;;  %v468_v55 = vmul.f32 %v466_v59, %v849_v23  ;;  %v469_v10 = vmul.f32 %v466_v59, %v851_v24  ;;  %v470_v12 = vmul.f32 %v466_v59, %v853_v25  ;;  %v487_v25 = vld [vmem:[#allocation11 + $0xf0] sm:$0xff] }
  0xa5   :  { %v444_v20 = vmul.f32 %v440_v3, %v435_v48  ;;  %v445_v31 = vmul.f32 %v441_v52, %v436_v49  ;;  %v446_v14 = vmul.f32 %v442_v5, %v437_v50  ;;  %v475_v26 = vstv %s1026_s26 }
  0xa6   :  { %v471_v13 = vadd.f32 %v467_v54, %v462_v51  ;;  %v472_v15 = vadd.f32 %v468_v55, %v463_v53  ;;  %v473_v16 = vadd.f32 %v469_v10, %v464_v6  ;;  %v474_v57 = vadd.f32 %v470_v12, %v465_v8 }
  0xa7   :  { %v406_v58 = vadd.f32 %v402_v47, %v361_v46  ;;  %v447_v17 = vmul.f32 %v443_v7, %v438_v62  ;;  %v448_v23 = vadd.f32 %v444_v20, %v403_v9  ;;  %v449_v29 = vadd.f32 %v445_v31, %v404_v60 }
  0xa8   :  { %v476_v21 = vadd.f32 %v475_v26, %v471_v13  ;;  %v477_v63 = vadd.f32 %v475_v26, %v472_v15  ;;  %v478_v27 = vadd.f32 %v475_v26, %v473_v16  ;;  %v479_v18 = vadd.f32 %v475_v26, %v474_v57 }
  0xa9   :  { %v450_v24 = vadd.f32 %v446_v14, %v405_v61  ;;  %v451_v19 = vadd.f32 %v447_v17, %v406_v58  ;;  %v506_v46 = vstv %s1055_s1 }
  0xaa   :  { %v480_v4 = vmax.f32 %v476_v21, 0.0  ;;  %v481_v35 = vmax.f32 %v477_v63, 0.0  ;;  %v482_v42 = vmax.f32 %v478_v27, 0.0  ;;  %v483_v11 = vmax.f32 %v479_v18, 0.0 }
  0xac   :  { %v489_v30 = vmul.f32 %v485_v28, %v480_v4  ;;  %v490_v56 = vmul.f32 %v486_v33, %v481_v35  ;;  %v491_v36 = vmul.f32 %v487_v25, %v482_v42  ;;  %v492_v37 = vmul.f32 %v488_v34, %v483_v11 }
  0xae   :  { %v493_v22 = vadd.f32 %v489_v30, %v448_v23  ;;  %v494_v38 = vadd.f32 %v490_v56, %v449_v29  ;;  %v495_v32 = vadd.f32 %v491_v36, %v450_v24  ;;  %v496_v39 = vadd.f32 %v492_v37, %v451_v19 }
  0xb0   :  { %v497_v40 = vadd.f32 %v494_v38, %v493_v22 }
  0xb2   :  { %v498_v41 = vadd.f32 %v497_v40, %v495_v32 }
  0xb4   :  { %v499_v43 = vadd.f32 %v498_v41, %v496_v39 }
  0xb6   :  { %v500_v0 = vrot.slane %v499_v43, 4 }
  0xb8   :  { %v501_v44 = vadd.f32 %v500_v0, %v499_v43 }
  0xba   :  { %v502_v1 = vrot.slane %v501_v44, 2 }
  0xbc   :  { %v503_v2 = vadd.f32 %v502_v1, %v501_v44 }
  0xbe   :  { %v504_v45 = vrot.slane %v503_v2, 1 }
  0xc0   :  { %v505_v47 = vadd.f32 %v504_v45, %v503_v2 }
  0xc2   :  { %v507_v48 = vadd.f32 %v506_v46, %v505_v47 }
  0xc4   :  { %508 = vst [vmem:[#allocation13] sm:$0x1] %v507_v48 }
  0xc5   :  { %677 = shalt.err (!%p674_p13)
}
  0xc6   :  { %s678_s8 = scalar_lea.hbm %s1060_s6, 16 }
  0xc7   :  { %p679_p0 = scmp.ne.s32.totalorder %s1060_s6, %s678_s8  ;;  %p682_p1 = scmp.lt.u32.totalorder %s678_s8, %s1060_s6 }
  0xc9   :  { %p684_p2 = pnand %p682_p1, %p679_p0 }
  0xcb   :  { %687 = shalt.err (!%p684_p2)
}
  0xcc   :  { %518 = dma.vmem_to_hbm [thread:$0]  %s516_s10, 16, %s1060_s6, [#allocation5]  }
  0xcd   :  { %696 = dma.done.wait [#allocation5], 16  }
  0xce   :  { %697 = vsyncadd [#allocation5], 4294967280 }
  0xcf   :  { %522 = vsyncpa [#allocation4], 1 }
  0xd0   :  { %523 = vsyncpa [#allocation9], 1 }
  0xd1   :  { %524 = vsyncpa [#allocation12], 1 }
  0xd2   :  { %525 = vsyncpa [#allocation5], 1 }
  0xd3   :  { %526 = vsyncpa [#allocation6], 1 }

</bundles_post_ra>
